<compile_context>
chip_gen: v5e
topology: v5e:2x2
jax: 0.10.0
libtpu: 0.0.40
codegen_flags: <defaults>
</compile_context>

<pallas_src>
import jax
import jax.numpy as jnp
from jax.experimental import pallas as pl
from jax.experimental.pallas import tpu as pltpu


def _cdiv(a: int, b: int) -> int:
    return (a + b - 1) // b


def _round_up(a: int, b: int) -> int:
    return _cdiv(a, b) * b


def _make_ls_ce_kernel(epsilon: float, n_classes: int, ck: int,
                       chunked: bool, needs_col_mask: bool):
    eps = float(epsilon)
    c_f = float(n_classes)
    inv_c = eps / c_f

    def kernel(logits_ref, tgt_ref, loss_ref, m_ref, l_ref, sx_ref, xt_ref):
        k = pl.program_id(1)

        @pl.when(k == 0)
        def _init():
            m_ref[...] = jnp.full_like(m_ref, -jnp.inf)
            l_ref[...] = jnp.zeros_like(l_ref)
            sx_ref[...] = jnp.zeros_like(sx_ref)
            xt_ref[...] = jnp.zeros_like(xt_ref)

        x_nat = logits_ref[...]                     # (TB, CK) native dtype
        tgt = tgt_ref[...]                          # (TB, 1)  int32

        col = jax.lax.broadcasted_iota(jnp.int32, x_nat.shape, 1)
        if chunked:
            col = col + k * ck                      # global class index

        # x[target]: one-hot select + reduce in native dtype (exact: the sum
        # only ever adds exact zeros and at most one value); accumulate in f32.
        zero_nat = jnp.array(0, dtype=x_nat.dtype)
        xt_ref[...] += jnp.sum(jnp.where(col == tgt, x_nat, zero_nat),
                               axis=-1, keepdims=True).astype(jnp.float32)

        if needs_col_mask:
            # Partial last chunk: garbage columns must not pollute max/sums.
            valid = col < n_classes
            x_nat = jnp.where(valid, x_nat,
                              jnp.array(-jnp.inf, dtype=x_nat.dtype))

        # Row max in native dtype (exact, packed for bf16); f32 accumulations.
        m_prev = m_ref[...]
        m_chunk = jnp.max(x_nat, axis=-1, keepdims=True).astype(jnp.float32)
        m_new = jnp.maximum(m_prev, m_chunk)

        xf = x_nat.astype(jnp.float32)              # masked cols are -inf
        alpha = jnp.exp(m_prev - m_new)             # online-softmax rescale
        l_ref[...] = alpha * l_ref[...] + jnp.sum(jnp.exp(xf - m_new),
                                                  axis=-1, keepdims=True)
        if needs_col_mask:
            sx_ref[...] += jnp.sum(jnp.where(valid, xf, 0.0),
                                   axis=-1, keepdims=True)
        else:
            sx_ref[...] += jnp.sum(xf, axis=-1, keepdims=True)
        m_ref[...] = m_new

        @pl.when(k == pl.num_programs(1) - 1)
        def _finalize():
            z = m_ref[...] + jnp.log(l_ref[...])    # rowwise log-sum-exp
            nll = z - xt_ref[...]                   # -log_softmax[target]
            sum_log_preds = sx_ref[...] - c_f * z   # sum_c log_softmax
            loss_ref[...] = nll * (1.0 - eps) - inv_c * sum_log_preds

    return kernel


def label_smoothed_ce_loss(outputs: jax.Array, targets: jax.Array,
                           epsilon: float = 0.1, *,
                           block_elems: int = 512 * 1024) -> jax.Array:
    """outputs: (B, C) float32/bfloat16 logits; targets: (B,) int class ids.
    Returns the scalar mean label-smoothed CE (matches the PyTorch module)."""
    B, C = outputs.shape
    tgt2d = targets.astype(jnp.int32).reshape(B, 1)

    dtype_bytes = jnp.dtype(outputs.dtype).itemsize
    # Sublane packing tile: 8 rows for 4-byte, 16 for 2-byte, 32 for 1-byte.
    row_floor = max(8, 32 // dtype_bytes)

    # Class-chunk (lane axis): full C when it fits the block budget at the
    # minimum row tile; otherwise a 128-multiple chunk + online reduction.
    max_ck = max(128, (block_elems // row_floor) // 128 * 128)
    if C <= max_ck:
        ck, chunked = C, False
    else:
        ck, chunked = max_ck, True
    nk = _cdiv(C, ck)
    needs_col_mask = chunked and (C % ck != 0)

    # Batch tile (sublane axis): as many rows as fit the block budget.
    tb = max(row_floor, (block_elems // ck) // row_floor * row_floor)
    tb = min(tb, 1024)
    if B <= tb:
        if B >= 2 * row_floor:
            # >=2 batch steps so the "parallel" axis can shard across both
            # TensorCores on v7x.
            tb = _round_up(_cdiv(B, 2), row_floor)
        else:
            tb = B                      # full-extent block: always layout-legal
    nb = _cdiv(B, tb)

    kernel = _make_ls_ce_kernel(epsilon, C, ck, chunked, needs_col_mask)
    per_row = pl.pallas_call(
        kernel,
        out_shape=jax.ShapeDtypeStruct((B, 1), jnp.float32),
        grid=(nb, nk),
        in_specs=[
            pl.BlockSpec((tb, ck), lambda i, k: (i, k)),   # logits, native dtype
            pl.BlockSpec((tb, 1), lambda i, k: (i, 0)),    # targets
        ],
        out_specs=pl.BlockSpec((tb, 1), lambda i, k: (i, 0)),
        scratch_shapes=[pltpu.VMEM((tb, 1), jnp.float32)] * 4,   # m, l, sum_x, x_t
        compiler_params=pltpu.CompilerParams(
            dimension_semantics=("parallel", "arbitrary"),
            vmem_limit_bytes=48 * 1024 * 1024,
        ),
    )(outputs, tgt2d)

    # Final mean over exactly B valid rows (padded tail rows are never written).
    return jnp.mean(per_row[:, 0])


def _reference(outputs, targets, epsilon=0.1):
    # Pure-JAX reference mirroring the PyTorch forward exactly.
    n_classes = outputs.shape[-1]
    log_preds = jax.nn.log_softmax(outputs.astype(jnp.float32), axis=-1)
    nll = -jnp.take_along_axis(log_preds, targets[:, None], axis=-1)[:, 0]
    loss = nll * (1.0 - epsilon) - epsilon / n_classes * jnp.sum(log_preds, axis=-1)
    return jnp.mean(loss)


if __name__ == "__main__":
    key = jax.random.PRNGKey(0)
    k1, k2, k3, k4, k5, k6 = jax.random.split(key, 6)

    # --- 1. small canonical case: batch=8, classes=32, f32, single tile ---
    B, C = 8, 32
    logits = jax.random.normal(k1, (B, C), dtype=jnp.float32)
    targets = jax.random.randint(k2, (B,), 0, C, dtype=jnp.int32)
    loss = jax.block_until_ready(label_smoothed_ce_loss(logits, targets, 0.1))
    ref = _reference(logits, targets, 0.1)
    assert jnp.allclose(loss, ref, atol=1e-5, rtol=1e-5), (loss, ref)

    # --- 2. tiled batch path: B not a multiple of the tile, bf16 logits ---
    B2, C2 = 520, 256
    logits2 = jax.random.normal(k3, (B2, C2), dtype=jnp.float32).astype(jnp.bfloat16)
    targets2 = jax.random.randint(k4, (B2,), 0, C2, dtype=jnp.int32)
    loss2 = jax.block_until_ready(label_smoothed_ce_loss(logits2, targets2, 0.1))
    ref2 = _reference(logits2, targets2, 0.1)
    assert jnp.allclose(loss2, ref2, atol=1e-4, rtol=1e-4), (loss2, ref2)

    # --- 3. class-chunked online-reduction path (small block budget forces
    #        nk>1, a masked partial last chunk, and a padded batch tail) ---
    B3, C3 = 52, 384
    logits3 = jax.random.normal(k5, (B3, C3), dtype=jnp.float32).astype(jnp.bfloat16)
    targets3 = jax.random.randint(k6, (B3,), 0, C3, dtype=jnp.int32)
    loss3 = jax.block_until_ready(
        label_smoothed_ce_loss(logits3, targets3, 0.1, block_elems=4096))
    ref3 = _reference(logits3, targets3, 0.1)
    assert jnp.allclose(loss3, ref3, atol=1e-4, rtol=1e-4), (loss3, ref3)

    print("KERNEL_OK")
</pallas_src>

<mosaic_0001>
module attributes {stable_mosaic.version = 11 : i64} {
  func.func @kernel(%arg0: i32, %arg1: i32, %arg2: memref<8x32xf32, #tpu.memory_space<vmem>>, %arg3: memref<8x1xi32, #tpu.memory_space<vmem>>, %arg4: memref<8x1xf32, #tpu.memory_space<vmem>>, %arg5: memref<8x1xf32, #tpu.memory_space<vmem>>, %arg6: memref<8x1xf32, #tpu.memory_space<vmem>>, %arg7: memref<8x1xf32, #tpu.memory_space<vmem>>, %arg8: memref<8x1xf32, #tpu.memory_space<vmem>>) attributes {dimension_semantics = [#tpu.dimension_semantics<parallel>, #tpu.dimension_semantics<arbitrary>], iteration_bounds = array<i64: 1, 1>, scalar_prefetch = 0 : i64, scratch_operands = 4 : i64, tpu.core_type = #tpu.core_type<tc>, window_params = [{transform_indices = @transform_0, window_bounds = array<i64: 8, 32>}, {transform_indices = @transform_1, window_bounds = array<i64: 8, 1>}, {transform_indices = @transform_2, window_bounds = array<i64: 8, 1>}]} {
    %c0_i32 = arith.constant 0 : i32
    %0 = arith.cmpi eq, %arg1, %c0_i32 : i32
    %1 = arith.extui %0 : i1 to i32
    %c0_i32_0 = arith.constant 0 : i32
    %2 = arith.cmpi ne, %1, %c0_i32_0 : i32
    scf.if %2 {
      %cst_26 = arith.constant 0xFF800000 : f32
      %39 = vector.broadcast %cst_26 : f32 to vector<8x1xf32>
      %c0_27 = arith.constant 0 : index
      %c0_28 = arith.constant 0 : index
      %40 = vector.load %arg5[%c0_27, %c0_28] : memref<8x1xf32, #tpu.memory_space<vmem>>, vector<8x1xf32>
      tpu.vector_store %arg5[%c0_27, %c0_28], %39 {strides = array<i32>} : memref<8x1xf32, #tpu.memory_space<vmem>>, vector<8x1xf32>,
      %cst_29 = arith.constant 0.000000e+00 : f32
      %41 = vector.broadcast %cst_29 : f32 to vector<8x1xf32>
      %c0_30 = arith.constant 0 : index
      %c0_31 = arith.constant 0 : index
      %42 = vector.load %arg6[%c0_30, %c0_31] : memref<8x1xf32, #tpu.memory_space<vmem>>, vector<8x1xf32>
      tpu.vector_store %arg6[%c0_30, %c0_31], %41 {strides = array<i32>} : memref<8x1xf32, #tpu.memory_space<vmem>>, vector<8x1xf32>,
      %cst_32 = arith.constant 0.000000e+00 : f32
      %43 = vector.broadcast %cst_32 : f32 to vector<8x1xf32>
      %c0_33 = arith.constant 0 : index
      %c0_34 = arith.constant 0 : index
      %44 = vector.load %arg7[%c0_33, %c0_34] : memref<8x1xf32, #tpu.memory_space<vmem>>, vector<8x1xf32>
      tpu.vector_store %arg7[%c0_33, %c0_34], %43 {strides = array<i32>} : memref<8x1xf32, #tpu.memory_space<vmem>>, vector<8x1xf32>,
      %cst_35 = arith.constant 0.000000e+00 : f32
      %45 = vector.broadcast %cst_35 : f32 to vector<8x1xf32>
      %c0_36 = arith.constant 0 : index
      %c0_37 = arith.constant 0 : index
      %46 = vector.load %arg8[%c0_36, %c0_37] : memref<8x1xf32, #tpu.memory_space<vmem>>, vector<8x1xf32>
      tpu.vector_store %arg8[%c0_36, %c0_37], %45 {strides = array<i32>} : memref<8x1xf32, #tpu.memory_space<vmem>>, vector<8x1xf32>,
    } else {
    }
    %c0 = arith.constant 0 : index
    %c0_1 = arith.constant 0 : index
    %3 = vector.load %arg2[%c0, %c0_1] : memref<8x32xf32, #tpu.memory_space<vmem>>, vector<8x32xf32>
    %c0_2 = arith.constant 0 : index
    %c0_3 = arith.constant 0 : index
    %4 = vector.load %arg3[%c0_2, %c0_3] : memref<8x1xi32, #tpu.memory_space<vmem>>, vector<8x1xi32>
    %5 = tpu.iota {dimensions = array<i32: 1>} : vector<8x32xi32>
    %c0_4 = arith.constant 0 : index
    %c0_5 = arith.constant 0 : index
    %6 = vector.load %arg8[%c0_4, %c0_5] : memref<8x1xf32, #tpu.memory_space<vmem>>, vector<8x1xf32>
    %7 = vector.broadcast %4 : vector<8x1xi32> to vector<8x32xi32>
    %8 = arith.cmpi eq, %5, %7 : vector<8x32xi32>
    %cst = arith.constant 0.000000e+00 : f32
    %9 = vector.broadcast %cst : f32 to vector<8x32xf32>
    %10 = arith.select %8, %3, %9 : vector<8x32xi1>, vector<8x32xf32>
    %cst_6 = arith.constant dense<0.000000e+00> : vector<8xf32>
    %11 = vector.multi_reduction <add>, %10, %cst_6 [1] : vector<8x32xf32> to vector<8xf32>
    %12 = vector.shape_cast %11 : vector<8xf32> to vector<8x1xf32>
    %13 = arith.addf %6, %12 : vector<8x1xf32>
    %c0_7 = arith.constant 0 : index
    %c0_8 = arith.constant 0 : index
    %14 = vector.load %arg8[%c0_7, %c0_8] : memref<8x1xf32, #tpu.memory_space<vmem>>, vector<8x1xf32>
    tpu.vector_store %arg8[%c0_7, %c0_8], %13 {strides = array<i32>} : memref<8x1xf32, #tpu.memory_space<vmem>>, vector<8x1xf32>,
    %c0_9 = arith.constant 0 : index
    %c0_10 = arith.constant 0 : index
    %15 = vector.load %arg5[%c0_9, %c0_10] : memref<8x1xf32, #tpu.memory_space<vmem>>, vector<8x1xf32>
    %cst_11 = arith.constant dense<0xFF800000> : vector<8xf32>
    %16 = vector.multi_reduction <maximumf>, %3, %cst_11 [1] : vector<8x32xf32> to vector<8xf32>
    %17 = vector.shape_cast %16 : vector<8xf32> to vector<8x1xf32>
    %18 = arith.maximumf %15, %17 : vector<8x1xf32>
    %19 = arith.subf %15, %18 : vector<8x1xf32>
    %20 = math.exp %19 : vector<8x1xf32>
    %c0_12 = arith.constant 0 : index
    %c0_13 = arith.constant 0 : index
    %21 = vector.load %arg6[%c0_12, %c0_13] : memref<8x1xf32, #tpu.memory_space<vmem>>, vector<8x1xf32>
    %22 = arith.mulf %20, %21 : vector<8x1xf32>
    %23 = vector.broadcast %18 : vector<8x1xf32> to vector<8x32xf32>
    %24 = arith.subf %3, %23 : vector<8x32xf32>
    %25 = math.exp %24 : vector<8x32xf32>
    %cst_14 = arith.constant dense<0.000000e+00> : vector<8xf32>
    %26 = vector.multi_reduction <add>, %25, %cst_14 [1] : vector<8x32xf32> to vector<8xf32>
    %27 = vector.shape_cast %26 : vector<8xf32> to vector<8x1xf32>
    %28 = arith.addf %22, %27 : vector<8x1xf32>
    %c0_15 = arith.constant 0 : index
    %c0_16 = arith.constant 0 : index
    %29 = vector.load %arg6[%c0_15, %c0_16] : memref<8x1xf32, #tpu.memory_space<vmem>>, vector<8x1xf32>
    tpu.vector_store %arg6[%c0_15, %c0_16], %28 {strides = array<i32>} : memref<8x1xf32, #tpu.memory_space<vmem>>, vector<8x1xf32>,
    %c0_17 = arith.constant 0 : index
    %c0_18 = arith.constant 0 : index
    %30 = vector.load %arg7[%c0_17, %c0_18] : memref<8x1xf32, #tpu.memory_space<vmem>>, vector<8x1xf32>
    %cst_19 = arith.constant dense<0.000000e+00> : vector<8xf32>
    %31 = vector.multi_reduction <add>, %3, %cst_19 [1] : vector<8x32xf32> to vector<8xf32>
    %32 = vector.shape_cast %31 : vector<8xf32> to vector<8x1xf32>
    %33 = arith.addf %30, %32 : vector<8x1xf32>
    %c0_20 = arith.constant 0 : index
    %c0_21 = arith.constant 0 : index
    %34 = vector.load %arg7[%c0_20, %c0_21] : memref<8x1xf32, #tpu.memory_space<vmem>>, vector<8x1xf32>
    tpu.vector_store %arg7[%c0_20, %c0_21], %33 {strides = array<i32>} : memref<8x1xf32, #tpu.memory_space<vmem>>, vector<8x1xf32>,
    %c0_22 = arith.constant 0 : index
    %c0_23 = arith.constant 0 : index
    %35 = vector.load %arg5[%c0_22, %c0_23] : memref<8x1xf32, #tpu.memory_space<vmem>>, vector<8x1xf32>
    tpu.vector_store %arg5[%c0_22, %c0_23], %18 {strides = array<i32>} : memref<8x1xf32, #tpu.memory_space<vmem>>, vector<8x1xf32>,
    %c0_i32_24 = arith.constant 0 : i32
    %36 = arith.cmpi eq, %arg1, %c0_i32_24 : i32
    %37 = arith.extui %36 : i1 to i32
    %c0_i32_25 = arith.constant 0 : i32
    %38 = arith.cmpi ne, %37, %c0_i32_25 : i32
    scf.if %38 {
      %c0_26 = arith.constant 0 : index
      %c0_27 = arith.constant 0 : index
      %39 = vector.load %arg5[%c0_26, %c0_27] : memref<8x1xf32, #tpu.memory_space<vmem>>, vector<8x1xf32>
      %c0_28 = arith.constant 0 : index
      %c0_29 = arith.constant 0 : index
      %40 = vector.load %arg6[%c0_28, %c0_29] : memref<8x1xf32, #tpu.memory_space<vmem>>, vector<8x1xf32>
      %41 = math.log %40 : vector<8x1xf32>
      %42 = arith.addf %39, %41 : vector<8x1xf32>
      %c0_30 = arith.constant 0 : index
      %c0_31 = arith.constant 0 : index
      %43 = vector.load %arg8[%c0_30, %c0_31] : memref<8x1xf32, #tpu.memory_space<vmem>>, vector<8x1xf32>
      %44 = arith.subf %42, %43 : vector<8x1xf32>
      %c0_32 = arith.constant 0 : index
      %c0_33 = arith.constant 0 : index
      %45 = vector.load %arg7[%c0_32, %c0_33] : memref<8x1xf32, #tpu.memory_space<vmem>>, vector<8x1xf32>
      %cst_34 = arith.constant 3.200000e+01 : f32
      %46 = vector.broadcast %cst_34 : f32 to vector<8x1xf32>
      %47 = arith.mulf %46, %42 : vector<8x1xf32>
      %48 = arith.subf %45, %47 : vector<8x1xf32>
      %cst_35 = arith.constant 0.899999976 : f32
      %49 = vector.broadcast %cst_35 : f32 to vector<8x1xf32>
      %50 = arith.mulf %44, %49 : vector<8x1xf32>
      %cst_36 = arith.constant 3.125000e-03 : f32
      %51 = vector.broadcast %cst_36 : f32 to vector<8x1xf32>
      %52 = arith.mulf %51, %48 : vector<8x1xf32>
      %53 = arith.subf %50, %52 : vector<8x1xf32>
      %c0_37 = arith.constant 0 : index
      %c0_38 = arith.constant 0 : index
      %54 = vector.load %arg4[%c0_37, %c0_38] : memref<8x1xf32, #tpu.memory_space<vmem>>, vector<8x1xf32>
      tpu.vector_store %arg4[%c0_37, %c0_38], %53 {strides = array<i32>} : memref<8x1xf32, #tpu.memory_space<vmem>>, vector<8x1xf32>,
    } else {
    }
    return
  }
  func.func @transform_0(%arg0: i32, %arg1: i32) -> (i32, i32) {
    %c0_i32 = arith.constant 0 : i32
    return %arg0, %arg1 : i32, i32
  }
  func.func @transform_1(%arg0: i32, %arg1: i32) -> (i32, i32) {
    %c0_i32 = arith.constant 0 : i32
    %c0_i32_0 = arith.constant 0 : i32
    return %arg0, %c0_i32 : i32, i32
  }
  func.func @transform_2(%arg0: i32, %arg1: i32) -> (i32, i32) {
    %c0_i32 = arith.constant 0 : i32
    %c0_i32_0 = arith.constant 0 : i32
    return %arg0, %c0_i32 : i32, i32
  }
}

</mosaic_0001>

<bundles_post_ra>
// kernel: tpu_custom_call.1
= control target key start
LH: loop header
LB: loop body
LE: loop exit
PB: predicated region body
PF: predicated region fallthrough
CT: control target
= control target key end

     0   :  { %vm30_vm0 = vcmask 261120   ;;  %vm15_vm1 = vcmask 7168   ;;  %v99_v1 = vmov -inf   ;;  %v100_v3 = vmov 0   ;;  %s139_s0 = inlined_call_operand.vmem [shape: f32[8,32], index: 0, kind: input, shape index: {}]   ;;  %s140_s1 = inlined_call_operand.vmem [shape: s32[8,1], index: 1, kind: input, shape index: {}]   ;;  %s141_s2 = inlined_call_operand.vmem [shape: f32[8,1], index: 2, kind: output, shape index: {}]  }
   0x1   :  { %v20_v0 = vld [vmem:[%s139_s0] sm:$0xff]  ;;  %16 = vst.msk [vmem:[#allocation2] sm:$0xff] %vm15_vm1, %v99_v1  ;;  %91 = vset.pattern.permute.xlu0 %v100_v3  ;;  %92 = vset.pattern.permute.xlu1 %v100_v3  ;;  %v101_v4 = vmov 0.0   ;;  %v22_v10 = vlaneseq }
   0x2   :  { %v38_v2 = vsel %vm30_vm0, %v20_v0, -inf  ;;  %17 = vst.msk [vmem:[#allocation3] sm:$0xff] %vm15_vm1, %v101_v4  ;;  %v21_v5 = vld [vmem:[%s140_s1] sm:$0xff]  ;;  %v61_v15 = vsel %vm30_vm0, %v20_v0, 0.0 }
   0x3   :  { %39 = vmax.xlane.f32.xlu0 %v38_v2  ;;  %18 = vst.msk [vmem:[#allocation4] sm:$0xff] %vm15_vm1, %v101_v4  ;;  %26 = vperm.xlu1 %92, %v21_v5   ;;  %v23_v11 = vand.u32 127, %v22_v10 }
   0x4   :  { %19 = vst.msk [vmem:[#allocation5] sm:$0xff] %vm15_vm1, %v101_v4 }
   0x8   :  { %v37_v6 = vld [vmem:[#allocation2] sm:$0xff] }
   0x9   :  { %v45_v29 = vld [vmem:[#allocation3] sm:$0xff] }
   0xa   :  { %v60_v24 = vld [vmem:[#allocation4] sm:$0xff] }
   0xb   :  { %v24_v21 = vld [vmem:[#allocation5] sm:$0xff] }
  0x75   :  { %v27_v12 = vpop.permute.xlu1 %26 }
  0x76   :  { %v40_v7 = vpop.xlane.xlu0 %39  ;;  %vm28_vm2 = vcmp.eq.s32.totalorder %v23_v11, %v27_v12 }
  0x77   :  { %v41_v8 = vmax.f32 %v37_v6, %v40_v7  ;;  %v29_v13 = vsel %vm28_vm2, %v20_v0, 0.0 }
  0x78   :  { %v31_v14 = vsel %vm30_vm0, %v29_v13, 0.0 }
  0x79   :  { %v42_v9 = vsub.f32 %v37_v6, %v41_v8  ;;  %66 = vst.msk [vmem:[#allocation2] sm:$0xff] %vm15_vm1, %v41_v8  ;;  %49 = vperm.xlu0 %91, %v41_v8   ;;  %32 = vadd.xlane.f32.xlu2 %v31_v14 }
  0x7b   :  { %v43_v27 = vmul.f32 1.442695, %v42_v9 }
  0x80   :  { %v70_v36 = vld [vmem:[#allocation2] sm:$0xff] }
  0x81   :  { %62 = vadd.xlane.f32.xlu2 %v61_v15 }
  0xeb   :  { %v50_v16 = vpop.permute.xlu0 %49 }
  0xec   :  { %v52_v17 = vsub.f32 %v20_v0, %v50_v16  ;;  %v33_v22 = vpop.xlane.xlu2 %32 }
  0xed   :  { %v34_v23 = vadd.f32 %v33_v22, %v24_v21 }
  0xee   :  { %v53_v18 = vmul.f32 1.442695, %v52_v17 }
  0xef   :  { %36 = vst.msk [vmem:[#allocation5] sm:$0xff] %vm15_vm1, %v34_v23 }
  0xf0   :  { %93 = vpow2.f32 %v53_v18 }
  0xf1   :  { %95 = vpow2.f32 %v43_v27 }
  0xf4   :  { %v63_v25 = vpop.xlane.xlu2 %62 }
  0xf5   :  { %v64_v26 = vadd.f32 %v63_v25, %v60_v24 }
  0xf6   :  { %v94_v19 = vpop.eup %93  ;;  %v75_v38 = vld [vmem:[#allocation5] sm:$0xff] }
  0xf7   :  { %v55_v20 = vsel %vm30_vm0, %v94_v19, 0.0  ;;  %65 = vst.msk [vmem:[#allocation4] sm:$0xff] %vm15_vm1, %v64_v26  ;;  %v96_v28 = vpop.eup %95 }
  0xf8   :  { %56 = vadd.xlane.f32.xlu1 %v55_v20  ;;  %v46_v30 = vmul.f32 %v96_v28, %v45_v29 }
  0xfe   :  { %v77_v39 = vld [vmem:[#allocation4] sm:$0xff] }
 0x16b   :  { %v57_v31 = vpop.xlane.xlu1 %56 }
 0x16c   :  { %v58_v32 = vadd.f32 %v57_v31, %v46_v30 }
 0x16e   :  { %59 = vst.msk [vmem:[#allocation3] sm:$0xff] %vm15_vm1, %v58_v32 }
 0x175   :  { %v71_v33 = vld [vmem:[#allocation3] sm:$0xff] }
 0x176   :  { %97 = vlog2.f32 %v71_v33 }
 0x17c   :  { %v98_v34 = vpop.eup %97 }
 0x17d   :  { %v73_v35 = vmul.f32 0.6931472, %v98_v34 }
 0x17f   :  { %v74_v37 = vadd.f32 %v73_v35, %v70_v36 }
 0x181   :  { %v76_v40 = vsub.f32 %v74_v37, %v75_v38  ;;  %v78_v41 = vmul.f32 32.0, %v74_v37 }
 0x183   :  { %v79_v42 = vsub.f32 %v77_v39, %v78_v41  ;;  %v80_v43 = vmul.f32 0.9, %v76_v40 }
 0x185   :  { %v81_v44 = vmul.f32 0.003125, %v79_v42 }
 0x187   :  { %v82_v45 = vsub.f32 %v80_v43, %v81_v44 }
 0x189   :  { %83 = vst.msk [vmem:[%s141_s2] sm:$0xff] %vm15_vm1, %v82_v45 }

</bundles_post_ra>
